<compile_context>
chip_gen: v7x
topology: tpu7x:2x2x1
jax: 0.10.0
libtpu: 0.0.40
codegen_flags: <defaults>
</compile_context>

<pallas_src>
import jax
import jax.numpy as jnp
import numpy as np
from jax import lax
from jax.experimental import pallas as pl
from jax.experimental.pallas import tpu as pltpu


# ---------------------------------------------------------------------------
# Hardware / tiling helpers
# ---------------------------------------------------------------------------

_VMEM_CAPACITY = None


def _vmem_capacity_bytes():
    """Physical VMEM per TensorCore (generation-aware, conservative fallback)."""
    global _VMEM_CAPACITY
    if _VMEM_CAPACITY is None:
        cap = 0
        try:
            cap = int(pltpu.get_tpu_info().vmem_capacity_bytes)
        except Exception:
            cap = 0
        # Fallback = smallest per-core VMEM of current generations (v7x: 64 MiB)
        _VMEM_CAPACITY = cap if cap > 0 else 64 * 1024 * 1024
    return _VMEM_CAPACITY


def _hidden_tile_budget():
    # Budget for the double-buffered hidden-state tiles held in VMEM per grid
    # step: ~32 MiB on v5e/v6e (128 MiB VMEM), ~16 MiB on v7x (64 MiB VMEM).
    return _vmem_capacity_bytes() // 4


def _pick_b_tile(B):
    # B never sits in the last-two dims of any avg-kernel block, so TB has no
    # (8,128) constraint.  Prefer >=2 programs along the parallel B axis so
    # both v7x TensorCores get work, with the largest TB that still allows it.
    for tb in (8, 4, 2, 1):
        if B % tb == 0 and B // tb >= 2:
            return tb
    return B          # B == 1: the S reduction is split across cores instead


def _pick_s_tile(S, TB, H, itemsize, n_hidden, budget, want_even_steps):
    if S <= 128:
        return S
    per_row = 2 * n_hidden * TB * H * itemsize      # double-buffered bytes / S row
    cap = max(128, (int(budget // per_row) // 128) * 128)
    start = (min(cap, S) // 128) * 128
    if want_even_steps:                              # enable the 2-way S split
        ts = start
        while ts >= 128:
            if S % ts == 0 and (S // ts) % 2 == 0:
                return ts
            ts -= 128
    ts = start
    while ts >= 128:
        if S % ts == 0:                              # keep blocks (8,128)-legal
            return ts
        ts -= 128
    # TODO(synk): masked/padded ragged-S edge tiles; the full-S fallback is
    # correct but can exceed the VMEM budget for very large ragged S*H.
    return S


def _vmem_limit_bytes(n_hidden, TB, TS, H, in_isize, out_isize):
    need = 2 * n_hidden * TB * TS * H * in_isize     # double-buffered hidden tiles
    need += 2 * TB * 8 * TS * 4                      # mask tiles (sublane-padded)
    need += 2 * TB * 8 * 4                           # inverse-denominator tiles
    need += 2 * TB * 8 * H * out_isize               # output block (padded)
    need += TB * 8 * H * 4                           # f32 accumulator scratch
    need += 8 * 1024 * 1024                          # compiler-internal slack
    cap = (_vmem_capacity_bytes() * 3) // 4          # ~96 MiB v5e/v6e, ~48 MiB v7x
    return int(min(max(need, 32 * 1024 * 1024), cap))


# ---------------------------------------------------------------------------
# Kernels
# ---------------------------------------------------------------------------

def _cls_kernel(h_ref, out_ref):
    # h_ref is only the (TB, S0, H) block that contains sequence position 0.
    out_ref[...] = h_ref[:, 0, :].astype(out_ref.dtype)


def _masked_sum_step(den_ref, mask_ref, h, out_ref, acc_ref):
    """One S-step of the masked mean: MXU contraction + f32 accumulator."""
    s = pl.program_id(2)

    @pl.when(s == 0)
    def _init():
        acc_ref[...] = jnp.zeros_like(acc_ref)

    m = mask_ref[...].astype(h.dtype)                # (TB, 1, TS); 0/1 -> exact
    # Batched (1 x TS) @ (TS x H) contraction on the MXU with f32 accumulation.
    # Avoids the mask lane->sublane relayout and the full-tile f32 intermediate
    # of a VPU masked sum; HIGHEST keeps f32 inputs at ~f32 accuracy.
    acc_ref[...] += lax.dot_general(
        m, h,
        dimension_numbers=(((2,), (1,)), ((0,), (0,))),
        preferred_element_type=jnp.float32,
        precision=lax.Precision.HIGHEST)             # (TB, 1, H)

    @pl.when(s == pl.num_programs(2) - 1)
    def _finalize():
        # (TB,1,H) * (TB,1,1) lane broadcast; the /den (and /2 for avg2) is
        # already folded into the precomputed inverse denominator.
        out_ref[...] = (acc_ref[...] * den_ref[...]).astype(out_ref.dtype)


def _avg_kernel(den_ref, mask_ref, h_ref, out_ref, acc_ref):
    _masked_sum_step(den_ref, mask_ref, h_ref[...], out_ref, acc_ref)


def _avg2_kernel(den_ref, mask_ref, ha_ref, hb_ref, out_ref, acc_ref):
    # The 0.5 of (ha+hb)/2 is folded into the precomputed inverse denominator.
    _masked_sum_step(den_ref, mask_ref, ha_ref[...] + hb_ref[...], out_ref, acc_ref)


# ---------------------------------------------------------------------------
# Wrappers
# ---------------------------------------------------------------------------

def _cls_pool(last_hidden):
    B, S, H = last_hidden.shape
    # TODO(synk): a plain XLA slice (last_hidden[:, 0]) is cheaper/fusable for
    # this tiny op; the Pallas kernel is kept for parity with the module port.
    TB = 8 if (B % 8 == 0 and B > 8) else B
    itemsize = np.dtype(last_hidden.dtype).itemsize
    S0 = min(S, 8 * max(1, 4 // itemsize))           # full packed sublane tile
    return pl.pallas_call(
        _cls_kernel,
        out_shape=jax.ShapeDtypeStruct((B, H), last_hidden.dtype),
        grid_spec=pltpu.PrefetchScalarGridSpec(
            num_scalar_prefetch=0,
            grid=(B // TB,),
            in_specs=[pl.BlockSpec((TB, S0, H), lambda i: (i, 0, 0))],
            out_specs=pl.BlockSpec((TB, H), lambda i: (i, 0)),
        ),
        compiler_params=pltpu.CompilerParams(
            dimension_semantics=("parallel",)),
    )(last_hidden)


def _masked_avg_pool(attention_mask, hiddens, scale):
    """Masked mean over the sequence axis of scale * sum(hiddens)."""
    B, S, H = hiddens[0].shape
    n_hidden = len(hiddens)
    in_dtype = hiddens[0].dtype
    in_isize = np.dtype(in_dtype).itemsize
    out_dtype = jnp.result_type(attention_mask.dtype, in_dtype)

    mask = attention_mask.astype(jnp.float32)
    # Precompute the inverse denominator (with the avg2 *0.5 folded in) once in
    # the XLA graph: removes a cross-lane reduce from every S step.
    # (All-zero mask rows give inf -> NaN, same as the PyTorch reference.)
    inv_den = (scale / jnp.sum(mask, axis=-1))[:, None, None]       # (B, 1, 1)
    mask3 = mask[:, None, :]                                        # (B, 1, S)

    TB = _pick_b_tile(B)
    n_b = B // TB
    TS = _pick_s_tile(S, TB, H, in_isize, n_hidden,
                      _hidden_tile_budget(), want_even_steps=(n_b == 1))
    n_s = S // TS
    # Split the S reduction across a leading 2-wide parallel axis when the B
    # axis has only one program (keeps both v7x TensorCores busy for tiny B).
    nc = 2 if (n_b == 1 and n_s % 2 == 0) else 1
    n_s_per = n_s // nc
    part_dtype = jnp.float32 if nc > 1 else out_dtype

    kernel = _avg_kernel if n_hidden == 1 else _avg2_kernel
    hidden_spec = pl.BlockSpec((TB, TS, H),
                               lambda c, i, s: (i, c * n_s_per + s, 0))
    in_specs = ([pl.BlockSpec((TB, 1, 1), lambda c, i, s: (i, 0, 0)),
                 pl.BlockSpec((TB, 1, TS),
                              lambda c, i, s: (i, 0, c * n_s_per + s))]
                + [hidden_spec] * n_hidden)

    partials = pl.pallas_call(
        kernel,
        out_shape=jax.ShapeDtypeStruct((nc * B, 1, H), part_dtype),
        grid_spec=pltpu.PrefetchScalarGridSpec(
            num_scalar_prefetch=0,
            grid=(nc, n_b, n_s_per),
            in_specs=in_specs,
            # Output ignores the S index -> f32 accumulator resident across S.
            out_specs=pl.BlockSpec((TB, 1, H),
                                   lambda c, i, s: (c * n_b + i, 0, 0)),
            scratch_shapes=[pltpu.VMEM((TB, 1, H), jnp.float32)],
        ),
        compiler_params=pltpu.CompilerParams(
            dimension_semantics=("parallel", "parallel", "arbitrary"),
            vmem_limit_bytes=_vmem_limit_bytes(
                n_hidden, TB, TS, H, in_isize, np.dtype(out_dtype).itemsize)),
    )(inv_den, mask3, *hiddens)

    partials = partials.reshape(nc, B, H)
    pooled = partials.sum(axis=0) if nc > 1 else partials[0]
    return pooled.astype(out_dtype)


def pooler_forward(pooler_type, attention_mask, last_hidden_state,
                   hidden_states=None, pooler_output=None):
    """Mirrors Pooler.forward(attention_mask, outputs)."""
    assert pooler_type in ['cls', 'cls_before_pooler', 'avg',
                           'avg_top2', 'avg_first_last'], \
        'unrecognized pooling type %s' % pooler_type
    if pooler_type in ['cls_before_pooler', 'cls']:
        return _cls_pool(last_hidden_state)
    elif pooler_type == 'avg':
        return _masked_avg_pool(attention_mask, (last_hidden_state,), 1.0)
    elif pooler_type == 'avg_first_last':
        return _masked_avg_pool(attention_mask,
                                (hidden_states[0], hidden_states[-1]), 0.5)
    elif pooler_type == 'avg_top2':
        return _masked_avg_pool(attention_mask,
                                (hidden_states[-1], hidden_states[-2]), 0.5)
    else:
        raise NotImplementedError


# ---------------------------------------------------------------------------
# Pure-JAX reference (for validation)
# ---------------------------------------------------------------------------

def pooler_ref(pooler_type, attention_mask, last_hidden_state,
               hidden_states=None):
    m = attention_mask
    if pooler_type in ['cls_before_pooler', 'cls']:
        return last_hidden_state[:, 0]
    elif pooler_type == 'avg':
        return (last_hidden_state * m[..., None]).sum(1) / m.sum(-1)[..., None]
    elif pooler_type == 'avg_first_last':
        h = (hidden_states[0] + hidden_states[-1]) / 2.0
        return (h * m[..., None]).sum(1) / m.sum(-1)[..., None]
    elif pooler_type == 'avg_top2':
        h = (hidden_states[-1] + hidden_states[-2]) / 2.0
        return (h * m[..., None]).sum(1) / m.sum(-1)[..., None]


# ---------------------------------------------------------------------------
# Main
# ---------------------------------------------------------------------------

def _run_case(B, S, H, n_layers, key, label):
    k_hs, k_len = jax.random.split(key)
    hidden_states = tuple(
        jax.random.normal(jax.random.fold_in(k_hs, i), (B, S, H), jnp.float32)
        for i in range(n_layers))
    last_hidden_state = hidden_states[-1]
    lengths = 1 + jax.random.randint(k_len, (B,), 0, S)             # in [1, S]
    attention_mask = (jnp.arange(S)[None, :] < lengths[:, None]).astype(jnp.float32)

    ok = True
    for ptype in ['cls', 'cls_before_pooler', 'avg', 'avg_top2', 'avg_first_last']:
        out = pooler_forward(ptype, attention_mask, last_hidden_state,
                             hidden_states=hidden_states)
        out = jax.block_until_ready(out)
        ref = pooler_ref(ptype, attention_mask, last_hidden_state, hidden_states)
        if out.shape != (B, H) or not np.allclose(np.asarray(out),
                                                  np.asarray(ref),
                                                  rtol=5e-5, atol=1e-5):
            ok = False
            print(f"MISMATCH [{label}] pooler_type={ptype}")
    return ok


if __name__ == "__main__":
    key = jax.random.PRNGKey(0)
    k_small, k_big, k_one = jax.random.split(key, 3)

    # Small shape consistent with the module (B=2, S=8, H=32).
    ok = _run_case(2, 8, 32, 3, k_small, "small")
    # Larger shape exercising the multi-program parallel B axis, the S-tiled
    # accumulator, the MXU contraction at scale, and the cls partial fetch.
    ok = _run_case(16, 1024, 256, 3, k_big, "tiled") and ok
    # B=1 exercises the 2-way S-reduction split across the parallel axis.
    ok = _run_case(1, 1024, 128, 3, k_one, "b1_split") and ok

    if ok:
        print("KERNEL_OK")
</pallas_src>

<mosaic_0001>
module attributes {stable_mosaic.version = 11 : i64} {
  func.func @_cls_kernel(%arg0: i32, %arg1: memref<2x8x32xf32, #tpu.memory_space<vmem>>, %arg2: memref<2x32xf32, #tpu.memory_space<vmem>>) attributes {dimension_semantics = [#tpu.dimension_semantics<parallel>], iteration_bounds = array<i64: 1>, scalar_prefetch = 0 : i64, scratch_operands = 0 : i64, tpu.core_type = #tpu.core_type<tc>, window_params = [{transform_indices = @transform_0, window_bounds = array<i64: 2, 8, 32>}, {transform_indices = @transform_1, window_bounds = array<i64: 2, 32>}]} {
    %c0 = arith.constant 0 : index
    %c0_0 = arith.constant 0 : index
    %c0_1 = arith.constant 0 : index
    %0 = vector.load %arg1[%c0, %c0_0, %c0_1] : memref<2x8x32xf32, #tpu.memory_space<vmem>>, vector<2x1x32xf32>
    %1 = vector.shape_cast %0 : vector<2x1x32xf32> to vector<2x32xf32>
    %c0_2 = arith.constant 0 : index
    %c0_3 = arith.constant 0 : index
    %2 = vector.load %arg2[%c0_2, %c0_3] : memref<2x32xf32, #tpu.memory_space<vmem>>, vector<2x32xf32>
    tpu.vector_store %arg2[%c0_2, %c0_3], %1 {strides = array<i32>} : memref<2x32xf32, #tpu.memory_space<vmem>>, vector<2x32xf32>,
    return
  }
  func.func @transform_0(%arg0: i32) -> (i32, i32, i32) {
    %c0_i32 = arith.constant 0 : i32
    %c0_i32_0 = arith.constant 0 : i32
    %c0_i32_1 = arith.constant 0 : i32
    return %arg0, %c0_i32, %c0_i32_0 : i32, i32, i32
  }
  func.func @transform_1(%arg0: i32) -> (i32, i32) {
    %c0_i32 = arith.constant 0 : i32
    %c0_i32_0 = arith.constant 0 : i32
    return %arg0, %c0_i32 : i32, i32
  }
}

</mosaic_0001>

<bundles_post_ra>
// kernel: tpu_custom_call.1
= control target key start
LH: loop header
LB: loop body
LE: loop exit
PB: predicated region body
PF: predicated region fallthrough
CT: control target
= control target key end

     0   :  { %6 = vsyncpa [#allocation3], 0  ;;  %s138_s0 = inlined_call_operand.hbm [shape: f32[2,8,32], index: 0, kind: input, shape index: {}]   ;;  %s139_s1 = inlined_call_operand.hbm [shape: f32[2,32], index: 1, kind: output, shape index: {}]  }
   0x1   :  { %7 = vsyncpa [#allocation4], 0  ;;  %s100_s6 = smov [#allocation2]   ;;  %s52_s10 = scalar_lea.hbm %s138_s0, 256 }
   0x2   :  { %s13_s7 = sshll.u32 %s100_s6, 4  ;;  %p53_p0 = scmp.ne.s32.totalorder %s138_s0, %s52_s10  ;;  %s14_s7 = int_to_ptr.vmem [resolvable:$true] %s13_s7 }
   0x3   :  { %p56_p1 = scmp.lt.u32.totalorder %s52_s10, %s138_s0 }
   0x5   :  { %p58_p2 = pnand %p56_p1, %p53_p0 }
   0x7   :  { %61 = shalt.err (!%p58_p2)
}
   0x8   :  { %s62_s15 = scalar_lea.vmem %s14_s7, 256  ;;  %p67_p4 = scmp.lt.s32.totalorder %s14_s7, %s14_s7 }
   0x9   :  { %p63_p3 = scmp.ne.s32.totalorder %s14_s7, %s62_s15  ;;  %p68_p5 = scmp.lt.s32.totalorder %s62_s15, %s62_s15 }
   0xb   :  { %p69_p6 = por %p68_p5, %p67_p4 }
   0xd   :  { %p70_p7 = pnand %p69_p6, %p63_p3 }
   0xf   :  { %73 = shalt.err (!%p70_p7)
}
  0x10   :  { %s101_s16 = smov 128   ;;  %s102_s17 = smov 8  }
  0x11   :  { %19 = dma.hbm_to_vmem [thread:$0]  %s138_s0, 256, %s14_s7, [#allocation3], %s101_s16, %s101_s16, %s102_s17  }
  0x12   :  { %96 = dma.done.wait [#allocation3], 256  }
  0x13   :  { %97 = vsyncadd [#allocation3], 4294967040  ;;  %s103_s20 = smov [#allocation5]   ;;  %v23_v0 = vld [vmem:[#allocation2] sm:$0x1]  ;;  %vm28_vm0 = vcmask 1041409  }
  0x14   :  { %s39_s21 = sshll.u32 %s103_s20, 4  ;;  %v24_v1 = vld [vmem:[#allocation2 + $0x8] sm:$0x1]  ;;  %vm31_vm1 = vcmask 254976   ;;  %s40_s21 = int_to_ptr.vmem [resolvable:$true] %s39_s21 }
  0x15   :  { %v27_v2 = vrot.slane %v24_v1, 7  ;;  %s74_s22 = scalar_lea.vmem %s40_s21, 32  ;;  %p79_p9 = scmp.lt.s32.totalorder %s40_s21, %s40_s21 }
  0x16   :  { %p75_p8 = scmp.ne.s32.totalorder %s40_s21, %s74_s22  ;;  %p80_p10 = scmp.lt.s32.totalorder %s74_s22, %s74_s22 }
  0x17   :  { %v29_v3 = vsel %vm28_vm0, %v27_v2, %v23_v0 }
  0x18   :  { %32 = vst.msk [vmem:[#allocation5] sm:$0x3] %vm31_vm1, %v29_v3  ;;  %p81_p11 = por %p80_p10, %p79_p9 }
  0x1a   :  { %p82_p12 = pnand %p81_p11, %p75_p8 }
  0x1c   :  { %85 = shalt.err (!%p82_p12)
}
  0x1d   :  { %s86_s24 = scalar_lea.hbm %s139_s1, 32 }
  0x1e   :  { %p87_p13 = scmp.ne.s32.totalorder %s139_s1, %s86_s24  ;;  %p90_p0 = scmp.lt.u32.totalorder %s86_s24, %s139_s1 }
  0x20   :  { %p92_p1 = pnand %p90_p0, %p87_p13 }
  0x22   :  { %95 = shalt.err (!%p92_p1)
}
  0x23   :  { %42 = dma.vmem_to_hbm [thread:$0]  %s40_s21, 32, %s139_s1, [#allocation4]  }
  0x24   :  { %98 = dma.done.wait [#allocation4], 32  }
  0x25   :  { %99 = vsyncadd [#allocation4], 4294967264 }
  0x26   :  { %46 = vsyncpa [#allocation3], 1 }
  0x27   :  { %47 = vsyncpa [#allocation4], 1 }

</bundles_post_ra>
